<compile_context>
chip_gen: v5e
topology: v5e:2x2
jax: 0.10.0
libtpu: 0.0.40
codegen_flags: <defaults>
</compile_context>

<pallas_src>
import functools

import jax
import jax.numpy as jnp
from jax.experimental import pallas as pl
from jax.experimental.pallas import tpu as pltpu


def _round_up(x, m):
    return ((x + m - 1) // m) * m


def _default_tanh_dtype():
    """bf16 tanh on v6e/v7x (bf16 EUP); f32 elsewhere (always correct, just slower)."""
    try:
        kind = jax.devices()[0].device_kind.lower()
    except Exception:
        kind = ""
    return jnp.bfloat16 if ("v6" in kind or "v7" in kind) else jnp.float32


def _head_kernel(x_ref, w1_ref, b1_ref, w2_ref, b2_ref, o_ref, *, tanh_dtype):
    # Cast features to the MXU compute dtype on the VPU (DMA stayed f32/native).
    x = x_ref[...].astype(w1_ref.dtype)
    # Layer 1: Linear(H, H) + tanh  (dropout = identity at inference)
    h = jnp.dot(x, w1_ref[...], preferred_element_type=jnp.float32)
    h = jnp.tanh((h + b1_ref[...]).astype(tanh_dtype))
    # Layer 2: Linear(H, Lp) + tanh (padded cols have zero weight / zero bias)
    y = jnp.dot(h.astype(w2_ref.dtype), w2_ref[...],
                preferred_element_type=jnp.float32)
    y = jnp.tanh(y + b2_ref[...])
    o_ref[...] = y.astype(o_ref.dtype)


def prepare_head_params(w_dense, b_dense, w_out, b_out,
                        *, compute_dtype=jnp.bfloat16):
    """One-time parameter prep (cast + lane-dense padding). Cache the result;
    do NOT re-run this per forward call.

    w_dense: [H, H] (in, out);  b_dense: [H] or [1, H]
    w_out:   [H, L] (in, out);  b_out:   [L] or [1, L]
    """
    H = w_dense.shape[0]
    L = w_out.shape[1]
    Lp = _round_up(max(L, 128), 128)   # lane-dense output -> unmasked vst
    w1 = jnp.asarray(w_dense).astype(compute_dtype)                     # [H, H]
    b1 = jnp.asarray(b_dense).reshape(1, H).astype(jnp.float32)         # [1, H]
    w2 = jnp.pad(jnp.asarray(w_out), ((0, 0), (0, Lp - L))).astype(compute_dtype)
    b2 = jnp.pad(jnp.asarray(b_out).reshape(1, L).astype(jnp.float32),
                 ((0, 0), (0, Lp - L)))                                  # [1, Lp]
    return {"w1": w1, "b1": b1, "w2": w2, "b2": b2, "num_labels": L}


def wav2vec2_classification_head_apply(features, params, *, block_b=1024,
                                       out_dtype=None, tanh_dtype=None):
    """features: [B, H] -> [B, L] (dtype = out_dtype, default = compute dtype)."""
    B, H = features.shape
    w1, b1, w2, b2 = params["w1"], params["b1"], params["w2"], params["b2"]
    L = params["num_labels"]
    Lp = w2.shape[1]
    out_dtype = out_dtype if out_dtype is not None else w1.dtype
    tanh_dtype = tanh_dtype if tanh_dtype is not None else _default_tanh_dtype()

    # Batch tile: large enough to amortize per-step overhead, but split into
    # >=2 tiles when possible so v7x's two TensorCores both get work.
    Bt = max(8, min(int(block_b), _round_up(-(-B // 2), 8)))
    grid_b = pl.cdiv(B, Bt)            # ragged last block handled by Pallas

    x_bytes = jnp.dtype(features.dtype).itemsize
    w_bytes = jnp.dtype(w1.dtype).itemsize
    o_bytes = jnp.dtype(out_dtype).itemsize

    # Double-buffered x / out tiles + resident weights & biases (+ headroom).
    vmem_needed = (2 * Bt * H * x_bytes
                   + 2 * Bt * Lp * o_bytes
                   + 2 * (H * H + H) * 4          # w1 + b1 (b1 is f32)
                   + 2 * (H * Lp + Lp) * 4)       # w2 + b2
    vmem_limit = int(min(64 << 20, max(32 << 20, int(vmem_needed * 1.5) + (4 << 20))))

    kernel = functools.partial(_head_kernel, tanh_dtype=tanh_dtype)

    out = pl.pallas_call(
        kernel,
        out_shape=jax.ShapeDtypeStruct((B, Lp), out_dtype),
        grid_spec=pltpu.PrefetchScalarGridSpec(
            num_scalar_prefetch=0,
            grid=(grid_b,),
            in_specs=[
                pl.BlockSpec((Bt, H), lambda i: (i, 0)),    # feature tile (pipelined)
                pl.BlockSpec((H, H), lambda i: (0, 0)),     # dense weight (resident)
                pl.BlockSpec((1, H), lambda i: (0, 0)),     # dense bias   (resident)
                pl.BlockSpec((H, Lp), lambda i: (0, 0)),    # out_proj weight (resident)
                pl.BlockSpec((1, Lp), lambda i: (0, 0)),    # out_proj bias   (resident)
            ],
            out_specs=pl.BlockSpec((Bt, Lp), lambda i: (i, 0)),
        ),
        compiler_params=pltpu.CompilerParams(
            dimension_semantics=("parallel",),
            vmem_limit_bytes=vmem_limit),
        cost_estimate=pl.CostEstimate(
            flops=2 * B * H * (H + Lp),
            transcendentals=B * (H + Lp),
            bytes_accessed=(B * H * x_bytes
                            + (H * H + H * Lp) * w_bytes
                            + (H + Lp) * 4
                            + B * Lp * o_bytes)),
    )(features, w1, b1, w2, b2)

    # Tiny lane slice in the consumer (kernel writes the lane-dense Lp slab).
    return out[:, :L]


def wav2vec2_classification_head(features, w_dense, b_dense, w_out, b_out,
                                 *, block_b=1024, compute_dtype=jnp.bfloat16,
                                 out_dtype=None):
    """Convenience wrapper. In real use, call prepare_head_params once and
    reuse the prepared params across forward calls."""
    params = prepare_head_params(w_dense, b_dense, w_out, b_out,
                                 compute_dtype=compute_dtype)
    return wav2vec2_classification_head_apply(features, params,
                                              block_b=block_b,
                                              out_dtype=out_dtype)


if __name__ == "__main__":
    # Small, module-consistent shapes: batch=8, hidden_size=32, num_labels=4
    B, H, L = 8, 32, 4
    key = jax.random.PRNGKey(0)
    k_x, k_w1, k_b1, k_w2, k_b2 = jax.random.split(key, 5)

    features = jax.random.normal(k_x, (B, H), dtype=jnp.float32)
    # Parameters stored as [in, out] (i.e. torch W.T).
    w_dense = jax.random.normal(k_w1, (H, H), dtype=jnp.float32) * 0.05
    b_dense = jax.random.normal(k_b1, (1, H), dtype=jnp.float32) * 0.05
    w_out = jax.random.normal(k_w2, (H, L), dtype=jnp.float32) * 0.05
    b_out = jax.random.normal(k_b2, (1, L), dtype=jnp.float32) * 0.05

    # One-time param prep (cached in real usage), then the kernel forward.
    params = prepare_head_params(w_dense, b_dense, w_out, b_out)
    out = wav2vec2_classification_head_apply(features, params)
    out = jax.block_until_ready(out)

    # Pure-JAX f32 reference of the spec forward (dropout = identity).
    h_ref = jnp.tanh(jnp.dot(features, w_dense) + b_dense)
    ref = jnp.tanh(jnp.dot(h_ref, w_out) + b_out)

    assert out.shape == (B, L), out.shape
    err = float(jnp.max(jnp.abs(out.astype(jnp.float32) - ref)))
    assert err < 2e-2, err

    print("KERNEL_OK")
</pallas_src>

<mosaic_0001>
module attributes {stable_mosaic.version = 11 : i64} {
  func.func @_head_kernel(%arg0: i32, %arg1: memref<8x32xf32, #tpu.memory_space<vmem>>, %arg2: memref<32x32xbf16, #tpu.memory_space<vmem>>, %arg3: memref<1x32xf32, #tpu.memory_space<vmem>>, %arg4: memref<32x128xbf16, #tpu.memory_space<vmem>>, %arg5: memref<1x128xf32, #tpu.memory_space<vmem>>, %arg6: memref<8x128xbf16, #tpu.memory_space<vmem>>) attributes {dimension_semantics = [#tpu.dimension_semantics<parallel>], iteration_bounds = array<i64: 1>, scalar_prefetch = 0 : i64, scratch_operands = 0 : i64, tpu.core_type = #tpu.core_type<tc>, window_params = [{transform_indices = @transform_0, window_bounds = array<i64: 8, 32>}, {pipeline_mode = #tpu.pipeline_mode<synchronous>, transform_indices = @transform_1, window_bounds = array<i64: 32, 32>}, {pipeline_mode = #tpu.pipeline_mode<synchronous>, transform_indices = @transform_2, window_bounds = array<i64: 1, 32>}, {pipeline_mode = #tpu.pipeline_mode<synchronous>, transform_indices = @transform_3, window_bounds = array<i64: 32, 128>}, {pipeline_mode = #tpu.pipeline_mode<synchronous>, transform_indices = @transform_4, window_bounds = array<i64: 1, 128>}, {transform_indices = @transform_5, window_bounds = array<i64: 8, 128>}]} {
    %c0 = arith.constant 0 : index
    %c0_0 = arith.constant 0 : index
    %0 = vector.load %arg1[%c0, %c0_0] : memref<8x32xf32, #tpu.memory_space<vmem>>, vector<8x32xf32>
    %1 = arith.truncf %0 : vector<8x32xf32> to vector<8x32xbf16>
    %c0_1 = arith.constant 0 : index
    %c0_2 = arith.constant 0 : index
    %2 = vector.load %arg2[%c0_1, %c0_2] : memref<32x32xbf16, #tpu.memory_space<vmem>>, vector<32x32xbf16>
    %cst = arith.constant dense<0.000000e+00> : vector<8x32xf32>
    %3 = tpu.matmul %1, %2, %cst {dimension_numbers = #tpu.dot_dimension_numbers<[1], [0], [0], [1], [0, 0, 1, 1], [], []>} : vector<8x32xbf16>, vector<32x32xbf16>, vector<8x32xf32> -> vector<8x32xf32>
    %c0_3 = arith.constant 0 : index
    %c0_4 = arith.constant 0 : index
    %4 = vector.load %arg3[%c0_3, %c0_4] : memref<1x32xf32, #tpu.memory_space<vmem>>, vector<1x32xf32>
    %5 = vector.broadcast %4 : vector<1x32xf32> to vector<8x32xf32>
    %6 = arith.addf %3, %5 : vector<8x32xf32>
    %7 = math.tanh %6 : vector<8x32xf32>
    %8 = arith.truncf %7 : vector<8x32xf32> to vector<8x32xbf16>
    %c0_5 = arith.constant 0 : index
    %c0_6 = arith.constant 0 : index
    %9 = vector.load %arg4[%c0_5, %c0_6] : memref<32x128xbf16, #tpu.memory_space<vmem>>, vector<32x128xbf16>
    %cst_7 = arith.constant dense<0.000000e+00> : vector<8x128xf32>
    %10 = tpu.matmul %8, %9, %cst_7 {dimension_numbers = #tpu.dot_dimension_numbers<[1], [0], [0], [1], [0, 0, 1, 1], [], []>} : vector<8x32xbf16>, vector<32x128xbf16>, vector<8x128xf32> -> vector<8x128xf32>
    %c0_8 = arith.constant 0 : index
    %c0_9 = arith.constant 0 : index
    %11 = vector.load %arg5[%c0_8, %c0_9] : memref<1x128xf32, #tpu.memory_space<vmem>>, vector<1x128xf32>
    %12 = vector.broadcast %11 : vector<1x128xf32> to vector<8x128xf32>
    %13 = arith.addf %10, %12 : vector<8x128xf32>
    %14 = math.tanh %13 : vector<8x128xf32>
    %15 = arith.truncf %14 : vector<8x128xf32> to vector<8x128xbf16>
    %c0_10 = arith.constant 0 : index
    %c0_11 = arith.constant 0 : index
    %16 = vector.load %arg6[%c0_10, %c0_11] : memref<8x128xbf16, #tpu.memory_space<vmem>>, vector<8x128xbf16>
    tpu.vector_store %arg6[%c0_10, %c0_11], %15 {strides = array<i32>} : memref<8x128xbf16, #tpu.memory_space<vmem>>, vector<8x128xbf16>,
    return
  }
  func.func @transform_0(%arg0: i32) -> (i32, i32) {
    %c0_i32 = arith.constant 0 : i32
    %c0_i32_0 = arith.constant 0 : i32
    return %arg0, %c0_i32 : i32, i32
  }
  func.func @transform_1(%arg0: i32) -> (i32, i32) {
    %c0_i32 = arith.constant 0 : i32
    %c0_i32_0 = arith.constant 0 : i32
    %c0_i32_1 = arith.constant 0 : i32
    return %c0_i32, %c0_i32_0 : i32, i32
  }
  func.func @transform_2(%arg0: i32) -> (i32, i32) {
    %c0_i32 = arith.constant 0 : i32
    %c0_i32_0 = arith.constant 0 : i32
    %c0_i32_1 = arith.constant 0 : i32
    return %c0_i32, %c0_i32_0 : i32, i32
  }
  func.func @transform_3(%arg0: i32) -> (i32, i32) {
    %c0_i32 = arith.constant 0 : i32
    %c0_i32_0 = arith.constant 0 : i32
    %c0_i32_1 = arith.constant 0 : i32
    return %c0_i32, %c0_i32_0 : i32, i32
  }
  func.func @transform_4(%arg0: i32) -> (i32, i32) {
    %c0_i32 = arith.constant 0 : i32
    %c0_i32_0 = arith.constant 0 : i32
    %c0_i32_1 = arith.constant 0 : i32
    return %c0_i32, %c0_i32_0 : i32, i32
  }
  func.func @transform_5(%arg0: i32) -> (i32, i32) {
    %c0_i32 = arith.constant 0 : i32
    %c0_i32_0 = arith.constant 0 : i32
    return %arg0, %c0_i32 : i32, i32
  }
}

</mosaic_0001>

<bundles_post_ra>
// kernel: tpu_custom_call.1
= control target key start
LH: loop header
LB: loop body
LE: loop exit
PB: predicated region body
PF: predicated region fallthrough
CT: control target
= control target key end

     0   :  { %10 = vsyncpa [#allocation3], 0  ;;  %s355_s0 = inlined_call_operand.hbm [shape: f32[8,32], index: 0, kind: input, shape index: {}]   ;;  %s356_s1 = inlined_call_operand.hbm [shape: bf16[32,32], index: 1, kind: input, shape index: {}]   ;;  %s357_s2 = inlined_call_operand.vmem [shape: f32[1,32], index: 2, kind: input, shape index: {}]   ;;  %s358_s3 = inlined_call_operand.hbm [shape: bf16[32,128], index: 3, kind: input, shape index: {}]   ;;  %s359_s4 = inlined_call_operand.vmem [shape: f32[1,128], index: 4, kind: input, shape index: {}]   ;;  %s360_s5 = inlined_call_operand.hbm [shape: bf16[8,128], index: 5, kind: output, shape index: {}]  }
   0x1   :  { %11 = vsyncpa [#allocation6], 0  ;;  %s28_s20 = sshll.u32 %s356_s1, 4  ;;  %s29_s20 = int_to_ptr.hbm [resolvable:$true] %s28_s20 }
   0x2   :  { %12 = vsyncpa [#allocation4], 0  ;;  %s301_s21 = smov [#allocation5]   ;;  %s18_s25 = sshll.u32 %s355_s0, 4  ;;  %s19_s25 = int_to_ptr.hbm [resolvable:$true] %s18_s25 }
   0x3   :  { %s30_s22 = sshll.u32 %s301_s21, 4  ;;  %s302_s26 = smov 64   ;;  %s31_s22 = int_to_ptr.vmem [resolvable:$true] %s30_s22 }
   0x4   :  { %s303_s27 = smov 4   ;;  %s304_s28 = smov [#allocation2]  }
   0x5   :  { %36 = dma.hbm_to_vmem [thread:$0]  %s29_s20, 256, %s31_s22, [#allocation6], %s302_s26, %s302_s26, %s303_s27  }
   0x6   :  { %s20_s29 = sshll.u32 %s304_s28, 4  ;;  %s43_s7 = sshll.u32 %s358_s3, 4  ;;  %s21_s29 = int_to_ptr.vmem [resolvable:$true] %s20_s29  ;;  %s44_s7 = int_to_ptr.hbm [resolvable:$true] %s43_s7 }
   0x7   :  { %23 = dma.hbm_to_vmem [thread:$0]  %s19_s25, 128, %s21_s29, [#allocation3]  }
   0x8   :  { %s305_s1 = smov [#allocation7]  }
   0x9   :  { %s45_s8 = sshll.u32 %s305_s1, 4  ;;  %s46_s8 = int_to_ptr.vmem [resolvable:$true] %s45_s8 }
   0xa   :  { %51 = dma.hbm_to_vmem [thread:$0]  %s44_s7, 256, %s46_s8, [#allocation6], %s302_s26, %s302_s26, %s303_s27  }
   0xb   :  { %295 = dma.done.wait [#allocation3], 128  }
   0xc   :  { %296 = vsyncadd [#allocation3], 4294967168 }
   0xd   :  { %297 = dma.done.wait [#allocation6], 512  }
   0xe   :  { %298 = vsyncadd [#allocation6], 4294966784  ;;  %v184_v0 = vld [vmem:[#allocation5 + $0x8] sm:$0xff]  ;;  %v183_v1 = vld [vmem:[#allocation5] sm:$0xff]  ;;  %vm89_vm0 = vcmask 261120   ;;  %s306_s11 = smov [#allocation8]  }
   0xf   :  { %99 = vmatpush.bf16.msra.mxu0 %v184_v0  ;;  %v67_v2 = vld [vmem:[#allocation2] sm:$0xff]  ;;  %v185_v5 = vld [vmem:[#allocation7] sm:$0xff]  ;;  %s152_s12 = sshll.u32 %s306_s11, 4  ;;  %s153_s12 = int_to_ptr.vmem [resolvable:$true] %s152_s12 }
  0x10   :  { %v68_v3 = vpack.c.bf16 %v67_v2, %v67_v2  ;;  %v186_v4 = vld [vmem:[#allocation7 + $0x8] sm:$0xff] }
  0x11   :  { %137 = vmatpush.bf16.msra.mxu1 %v186_v4  ;;  %v193_v6 = vld [vmem:[%s357_s2] ss:$0 sm:$0xff]  ;;  %s154_s2 = sshll.u32 %s360_s5, 4  ;;  %s155_s2 = int_to_ptr.hbm [resolvable:$true] %s154_s2 }
  0x12   :  { %v194_v12 = vld [vmem:[%s359_s4] ss:$0 sm:$0xff] }
  0x13   :  { %100 = vmatpush.bf16.msra.mxu0 %v183_v1 }
  0x15   :  { %138 = vmatpush.bf16.msra.mxu1 %v185_v5 }
  0x16   :  { %173 = vmatmul.msk.bf16.vlgmr.msra.gmra.mxu0 %vm89_vm0, %v68_v3 }
  0x93   :  { %v102_v7 = vpop.f32.mrf.mxu0 }
  0x94   :  { %v103_v8 = vadd.f32 %v193_v6, %v102_v7 }
  0x96   :  { %195 = vtanh.f32 %v103_v8 }
  0x9b   :  { %v104_v9 = vpop.f32.mrf.mxu0 }
  0x9c   :  { %v196_v10 = vpop.eup %195 }
  0x9d   :  { %v107_v11 = vpack.c.bf16 %v196_v10, %v196_v10 }
  0x9f   :  { %182 = vmatmul.msk.bf16.vlgmr.msra.gmra.mxu1 %vm89_vm0, %v107_v11 }
 0x11c   :  { %v140_v13 = vpop.f32.mrf.mxu1 }
 0x11d   :  { %v141_v14 = vadd.f32 %v194_v12, %v140_v13 }
 0x11f   :  { %197 = vtanh.f32 %v141_v14 }
 0x124   :  { %v142_v15 = vpop.f32.mrf.mxu1 }
 0x125   :  { %v198_v16 = vpop.eup %197 }
 0x126   :  { %v145_v17 = vpack.c.bf16 %v198_v16, %v198_v16 }
 0x128   :  { %146 = vst [vmem:[#allocation8] sm:$0xf] %v145_v17 }
 0x129   :  { %157 = dma.vmem_to_hbm [thread:$0]  %s153_s12, 64, %s155_s2, [#allocation4]  }
 0x12a   :  { %299 = dma.done.wait [#allocation4], 64  }
 0x12b   :  { %300 = vsyncadd [#allocation4], 4294967232 }
 0x12c   :  { %162 = vsyncpa [#allocation3], 1 }
 0x12d   :  { %163 = vsyncpa [#allocation6], 1 }
 0x12e   :  { %164 = vsyncpa [#allocation4], 1 }

</bundles_post_ra>
